<compile_context>
chip_gen: v7x
topology: tpu7x:2x2x1
jax: 0.10.0
libtpu: 0.0.40
codegen_flags: <defaults>
</compile_context>

<pallas_src>
import functools

import jax
import jax.numpy as jnp
from jax import lax
from jax.experimental import pallas as pl
from jax.experimental.pallas import tpu as pltpu


CIN_PAD = 8        # channels padded to one sublane tile
NCLS_PAD = 128     # classes padded to one lane tile (lane-dense output store)


def _round_up(x, m):
    return (x + m - 1) // m * m


# ------------------------------ kernel bodies --------------------------------

def _conv_pool_fc_tail(act_ref, pt_ref, wc_ref, bc_ref, wfc_ref, bfc_ref, o_ref,
                       *, K, Wp, Lc):
    """KxK conv (taps = static lane slices of padded-stride layout) + ReLU
    + global average pool + FC.  All operands stay in VMEM / vregs."""
    cout = wc_ref.shape[1]
    acc = jnp.zeros((cout, Lc), jnp.float32)
    for t in range(K * K):                       # unrolled; 1-2 taps live at a time
        dy, dx = divmod(t, K)
        s = dy * Wp + dx                         # tap offset in padded-stride coords
        tap = act_ref[:, s:s + Lc]               # (8, Lc) static slice, no relayout
        acc = acc + jnp.dot(wc_ref[t], tap,      # (cout,8)@(8,Lc) accumulating matmul
                            preferred_element_type=jnp.float32)
    h = jnp.maximum(acc + bc_ref[...], 0.0)      # (cout, Lc)

    # Global average pool via MXU: pooling matrix selects each image's valid
    # output columns and scales by 1/(H*W).  (NB, Lc) . (cout, Lc)^T -> (NB, cout)
    pooled = lax.dot_general(pt_ref[...], h, (((1,), (1,)), ((), ())),
                             preferred_element_type=jnp.float32)

    # FC, batched over the images of this block; lane-dense (NB, 128) store.
    o_ref[0] = (jnp.dot(pooled, wfc_ref[...], preferred_element_type=jnp.float32)
                + bfc_ref[...])


def _direct_conv_kernel(x_ref, pt_ref, wc_ref, bc_ref, wfc_ref, bfc_ref, o_ref,
                        *, K, Wp, Lc):
    """KxK conv -> ReLU -> pool -> FC, taps sliced straight from the input block."""
    _conv_pool_fc_tail(x_ref, pt_ref, wc_ref, bc_ref, wfc_ref, bfc_ref, o_ref,
                       K=K, Wp=Wp, Lc=Lc)


def _pw_conv_kernel(x_ref, mv_ref, pt_ref, w0_ref, b0_ref, wc_ref, bc_ref,
                    wfc_ref, bfc_ref, o_ref, act_ref, *, K, Wp, Lc):
    """1x1 conv -> ReLU -> (zero padding via mask) -> 3x3 conv -> ... -> FC."""
    h0 = jnp.dot(w0_ref[...], x_ref[...], preferred_element_type=jnp.float32)
    h0 = jnp.maximum(h0 + b0_ref[...], 0.0) * mv_ref[...]   # zero the pad columns
    act_ref[...] = h0                                        # full-width aligned store
    _conv_pool_fc_tail(act_ref, pt_ref, wc_ref, bc_ref, wfc_ref, bfc_ref, o_ref,
                       K=K, Wp=Wp, Lc=Lc)


# --------------------------- wrapper-side packing -----------------------------

def _pack_input(x, K, G, NB):
    """(N, Cin, H, W) -> (G*8, A) lane-dense padded-stride flat layout (f32)."""
    N, Cin, H, W = x.shape
    pad = K // 2
    Hp, Wp = H + 2 * pad, W + 2 * pad
    Lc = NB * Hp * Wp
    smax = (K - 1) * Wp + (K - 1)
    A = _round_up(Lc + smax, 128)
    xp = jnp.pad(x.astype(jnp.float32),
                 ((0, 0), (0, CIN_PAD - Cin), (pad, pad), (pad, pad)))
    xp = xp.reshape(G, NB, CIN_PAD, Hp * Wp)
    xp = jnp.transpose(xp, (0, 2, 1, 3)).reshape(G * CIN_PAD, Lc)
    xp = jnp.pad(xp, ((0, 0), (0, A - Lc)))
    return xp, Hp, Wp, Lc, A


def _pack_conv_w(w):
    """(Cout, Cin, K, K) -> (K*K, Cout, 8): per-tap weights, cin padded to 8."""
    cout, cin, K, _ = w.shape
    wt = jnp.transpose(w.astype(jnp.float32), (2, 3, 0, 1)).reshape(K * K, cout, cin)
    return jnp.pad(wt, ((0, 0), (0, 0), (0, CIN_PAD - cin)))


def _pool_matrix_t(H, W, Hp, Wp, NB):
    """(NB, NB*Hp*Wp): 1/(H*W) at each image's valid output columns, else 0."""
    q = jnp.arange(NB * Hp * Wp)
    ql = q % (Hp * Wp)
    valid = ((ql // Wp) < H) & ((ql % Wp) < W)
    nq = q // (Hp * Wp)
    rows = [jnp.where(valid & (nq == n), 1.0 / (H * W), 0.0) for n in range(NB)]
    return jnp.stack(rows, axis=0).astype(jnp.float32)


def _interior_mask(H, W, Hp, Wp, NB, A):
    """(1, A): 1 at real-image columns of the padded-stride layout, else 0."""
    pad = (Hp - H) // 2
    c = jnp.arange(A)
    cl = c % (Hp * Wp)
    yp, xq = cl // Wp, cl % Wp
    valid = ((c < NB * Hp * Wp) & (yp >= pad) & (yp < pad + H)
             & (xq >= pad) & (xq < pad + W))
    return jnp.where(valid, 1.0, 0.0).astype(jnp.float32).reshape(1, A)


def _pick_grid_blocks(n):
    """Single grid step on single-TC chips (v5e/v6e); 2-way split on v7x."""
    try:
        kind = jax.devices()[0].device_kind.lower()
    except Exception:
        return 1
    if "v7" in kind and n % 2 == 0:
        return 2
    return 1


# ----------------------------------- wrapper ----------------------------------

@functools.partial(jax.jit, static_argnames=("kernel_type", "grid_blocks"))
def cnn_forward(x, params, kernel_type, grid_blocks=1):
    N, Cin, H, W = x.shape
    G = grid_blocks
    assert N % G == 0
    NB = N // G

    cw = params["conv_w"]
    cout, _, K, _ = cw.shape
    ncls = params["fc_w"].shape[0]

    x_packed, Hp, Wp, Lc, A = _pack_input(x, K, G, NB)
    pt = _pool_matrix_t(H, W, Hp, Wp, NB)                       # (NB, Lc)
    wconv = _pack_conv_w(cw)                                    # (KK, cout, 8)
    bconv = params["conv_b"].astype(jnp.float32).reshape(cout, 1)
    wfc = jnp.pad(params["fc_w"].T.astype(jnp.float32),
                  ((0, 0), (0, NCLS_PAD - ncls)))               # (cout, 128)
    bfc = jnp.pad(params["fc_b"].astype(jnp.float32),
                  (0, NCLS_PAD - ncls)).reshape(1, NCLS_PAD)

    cparams = pltpu.CompilerParams(dimension_semantics=("parallel",))
    out_shape = jax.ShapeDtypeStruct((G, NB, NCLS_PAD), jnp.float32)
    out_spec = pl.BlockSpec((1, NB, NCLS_PAD), lambda g: (g, 0, 0))
    x_spec = pl.BlockSpec((CIN_PAD, A), lambda g: (g, 0))

    def full2(arr):
        return pl.BlockSpec(arr.shape, lambda g: (0, 0))

    def full3(arr):
        return pl.BlockSpec(arr.shape, lambda g: (0, 0, 0))

    if kernel_type == "1x1+3x3":
        cmid = params["conv0_w"].shape[0]
        w0 = jnp.pad(params["conv0_w"].astype(jnp.float32).reshape(cmid, Cin),
                     ((0, CIN_PAD - cmid), (0, CIN_PAD - Cin)))           # (8, 8)
        b0 = jnp.pad(params["conv0_b"].astype(jnp.float32),
                     (0, CIN_PAD - cmid)).reshape(CIN_PAD, 1)             # (8, 1)
        mvalid = _interior_mask(H, W, Hp, Wp, NB, A)                      # (1, A)

        out = pl.pallas_call(
            functools.partial(_pw_conv_kernel, K=K, Wp=Wp, Lc=Lc),
            out_shape=out_shape,
            grid_spec=pltpu.PrefetchScalarGridSpec(
                num_scalar_prefetch=0,
                grid=(G,),
                in_specs=[x_spec, full2(mvalid), full2(pt), full2(w0), full2(b0),
                          full3(wconv), full2(bconv), full2(wfc), full2(bfc)],
                out_specs=out_spec,
                scratch_shapes=[pltpu.VMEM((CIN_PAD, A), jnp.float32)],
            ),
            compiler_params=cparams,
        )(x_packed, mvalid, pt, w0, b0, wconv, bconv, wfc, bfc)
    else:
        out = pl.pallas_call(
            functools.partial(_direct_conv_kernel, K=K, Wp=Wp, Lc=Lc),
            out_shape=out_shape,
            grid_spec=pltpu.PrefetchScalarGridSpec(
                num_scalar_prefetch=0,
                grid=(G,),
                in_specs=[x_spec, full2(pt), full3(wconv), full2(bconv),
                          full2(wfc), full2(bfc)],
                out_specs=out_spec,
            ),
            compiler_params=cparams,
        )(x_packed, pt, wconv, bconv, wfc, bfc)

    return out.reshape(N, NCLS_PAD)[:, :ncls]


# --------------------------- params + pure-JAX reference ----------------------

def init_params(key, kernel_type, in_channels, num_classes):
    ks = jax.random.split(key, 6)

    def winit(k, shape, fan_in):
        return jax.random.normal(k, shape, jnp.float32) / jnp.sqrt(float(fan_in))

    p = {}
    if kernel_type == "1x1+3x3":
        p["conv0_w"] = winit(ks[0], (8, in_channels, 1, 1), in_channels)
        p["conv0_b"] = winit(ks[1], (8,), in_channels)
        K, cin = 3, 8
    else:
        K = {"3x3": 3, "5x5": 5, "7x7": 7}[kernel_type]
        cin = in_channels
    p["conv_w"] = winit(ks[2], (16, cin, K, K), cin * K * K)
    p["conv_b"] = winit(ks[3], (16,), cin * K * K)
    p["fc_w"] = winit(ks[4], (num_classes, 16), 16)      # PyTorch (out, in) layout
    p["fc_b"] = winit(ks[5], (num_classes,), 16)
    return p


def reference_forward(x, params, kernel_type):
    dn = ("NCHW", "OIHW", "NCHW")
    h = x
    if kernel_type == "1x1+3x3":
        h = lax.conv_general_dilated(h, params["conv0_w"], (1, 1), "VALID",
                                     dimension_numbers=dn)
        h = jnp.maximum(h + params["conv0_b"].reshape(1, -1, 1, 1), 0.0)
    K = params["conv_w"].shape[-1]
    pad = K // 2
    h = lax.conv_general_dilated(h, params["conv_w"], (1, 1),
                                 [(pad, pad), (pad, pad)], dimension_numbers=dn)
    h = jnp.maximum(h + params["conv_b"].reshape(1, -1, 1, 1), 0.0)
    pooled = jnp.mean(h, axis=(2, 3))                    # AdaptiveAvgPool2d((1,1))
    return pooled @ params["fc_w"].T + params["fc_b"]    # Linear(16, ncls)


# ------------------------------------ main ------------------------------------

if __name__ == "__main__":
    N, C_IN, H, W = 2, 4, 16, 16
    NUM_CLASSES = 10

    key = jax.random.PRNGKey(0)
    kx, kp = jax.random.split(key)
    x = jax.random.normal(kx, (N, C_IN, H, W), jnp.float32)   # NCHW, like PyTorch

    G = _pick_grid_blocks(N)

    for kernel_type in ("3x3", "5x5", "7x7", "1x1+3x3"):
        params = init_params(kp, kernel_type, C_IN, NUM_CLASSES)
        out = cnn_forward(x, params, kernel_type=kernel_type, grid_blocks=G)
        out = jax.block_until_ready(out)
        ref = reference_forward(x, params, kernel_type)
        assert out.shape == (N, NUM_CLASSES)
        err = float(jnp.max(jnp.abs(out - ref)))
        assert jnp.allclose(out, ref, rtol=1e-3, atol=1e-3), (
            f"{kernel_type}: max abs err {err}")

    print("KERNEL_OK")
</pallas_src>

<mosaic_0001>
module attributes {stable_mosaic.version = 11 : i64} {
  func.func @_direct_conv_kernel(%arg0: i32, %arg1: memref<8x768xf32, #tpu.memory_space<vmem>>, %arg2: memref<2x648xf32, #tpu.memory_space<vmem>>, %arg3: memref<9x16x8xf32, #tpu.memory_space<vmem>>, %arg4: memref<16x1xf32, #tpu.memory_space<vmem>>, %arg5: memref<16x128xf32, #tpu.memory_space<vmem>>, %arg6: memref<1x128xf32, #tpu.memory_space<vmem>>, %arg7: memref<1x2x128xf32, #tpu.memory_space<vmem>>) attributes {dimension_semantics = [#tpu.dimension_semantics<parallel>], iteration_bounds = array<i64: 1>, scalar_prefetch = 0 : i64, scratch_operands = 0 : i64, tpu.core_type = #tpu.core_type<tc>, window_params = [{transform_indices = @transform_0, window_bounds = array<i64: 8, 768>}, {pipeline_mode = #tpu.pipeline_mode<synchronous>, transform_indices = @transform_1, window_bounds = array<i64: 2, 648>}, {pipeline_mode = #tpu.pipeline_mode<synchronous>, transform_indices = @transform_2, window_bounds = array<i64: 9, 16, 8>}, {pipeline_mode = #tpu.pipeline_mode<synchronous>, transform_indices = @transform_3, window_bounds = array<i64: 16, 1>}, {pipeline_mode = #tpu.pipeline_mode<synchronous>, transform_indices = @transform_4, window_bounds = array<i64: 16, 128>}, {pipeline_mode = #tpu.pipeline_mode<synchronous>, transform_indices = @transform_5, window_bounds = array<i64: 1, 128>}, {transform_indices = @transform_6, window_bounds = array<i64: 1, 2, 128>}]} {
    %cst = arith.constant 0.000000e+00 : f32
    %0 = vector.broadcast %cst : f32 to vector<16x648xf32>
    %c0 = arith.constant 0 : index
    %c0_0 = arith.constant 0 : index
    %1 = vector.load %arg1[%c0, %c0_0] : memref<8x768xf32, #tpu.memory_space<vmem>>, vector<8x648xf32>
    %c0_1 = arith.constant 0 : index
    %c0_2 = arith.constant 0 : index
    %c0_3 = arith.constant 0 : index
    %2 = vector.load %arg3[%c0_1, %c0_2, %c0_3] : memref<9x16x8xf32, #tpu.memory_space<vmem>>, vector<1x16x8xf32>
    %3 = vector.shape_cast %2 : vector<1x16x8xf32> to vector<16x8xf32>
    %cst_4 = arith.constant dense<0.000000e+00> : vector<16x648xf32>
    %4 = tpu.matmul %3, %1, %cst_4 {dimension_numbers = #tpu.dot_dimension_numbers<[1], [0], [0], [1], [0, 0, 1, 1], [], []>} : vector<16x8xf32>, vector<8x648xf32>, vector<16x648xf32> -> vector<16x648xf32>
    %5 = arith.addf %0, %4 : vector<16x648xf32>
    %c0_5 = arith.constant 0 : index
    %c1 = arith.constant 1 : index
    %6 = vector.load %arg1[%c0_5, %c1] : memref<8x768xf32, #tpu.memory_space<vmem>>, vector<8x648xf32>
    %c1_6 = arith.constant 1 : index
    %c0_7 = arith.constant 0 : index
    %c0_8 = arith.constant 0 : index
    %7 = vector.load %arg3[%c1_6, %c0_7, %c0_8] : memref<9x16x8xf32, #tpu.memory_space<vmem>>, vector<1x16x8xf32>
    %8 = vector.shape_cast %7 : vector<1x16x8xf32> to vector<16x8xf32>
    %cst_9 = arith.constant dense<0.000000e+00> : vector<16x648xf32>
    %9 = tpu.matmul %8, %6, %cst_9 {dimension_numbers = #tpu.dot_dimension_numbers<[1], [0], [0], [1], [0, 0, 1, 1], [], []>} : vector<16x8xf32>, vector<8x648xf32>, vector<16x648xf32> -> vector<16x648xf32>
    %10 = arith.addf %5, %9 : vector<16x648xf32>
    %c0_10 = arith.constant 0 : index
    %c2 = arith.constant 2 : index
    %11 = vector.load %arg1[%c0_10, %c2] : memref<8x768xf32, #tpu.memory_space<vmem>>, vector<8x648xf32>
    %c2_11 = arith.constant 2 : index
    %c0_12 = arith.constant 0 : index
    %c0_13 = arith.constant 0 : index
    %12 = vector.load %arg3[%c2_11, %c0_12, %c0_13] : memref<9x16x8xf32, #tpu.memory_space<vmem>>, vector<1x16x8xf32>
    %13 = vector.shape_cast %12 : vector<1x16x8xf32> to vector<16x8xf32>
    %cst_14 = arith.constant dense<0.000000e+00> : vector<16x648xf32>
    %14 = tpu.matmul %13, %11, %cst_14 {dimension_numbers = #tpu.dot_dimension_numbers<[1], [0], [0], [1], [0, 0, 1, 1], [], []>} : vector<16x8xf32>, vector<8x648xf32>, vector<16x648xf32> -> vector<16x648xf32>
    %15 = arith.addf %10, %14 : vector<16x648xf32>
    %c0_15 = arith.constant 0 : index
    %c18 = arith.constant 18 : index
    %16 = vector.load %arg1[%c0_15, %c18] : memref<8x768xf32, #tpu.memory_space<vmem>>, vector<8x648xf32>
    %c3 = arith.constant 3 : index
    %c0_16 = arith.constant 0 : index
    %c0_17 = arith.constant 0 : index
    %17 = vector.load %arg3[%c3, %c0_16, %c0_17] : memref<9x16x8xf32, #tpu.memory_space<vmem>>, vector<1x16x8xf32>
    %18 = vector.shape_cast %17 : vector<1x16x8xf32> to vector<16x8xf32>
    %cst_18 = arith.constant dense<0.000000e+00> : vector<16x648xf32>
    %19 = tpu.matmul %18, %16, %cst_18 {dimension_numbers = #tpu.dot_dimension_numbers<[1], [0], [0], [1], [0, 0, 1, 1], [], []>} : vector<16x8xf32>, vector<8x648xf32>, vector<16x648xf32> -> vector<16x648xf32>
    %20 = arith.addf %15, %19 : vector<16x648xf32>
    %c0_19 = arith.constant 0 : index
    %c19 = arith.constant 19 : index
    %21 = vector.load %arg1[%c0_19, %c19] : memref<8x768xf32, #tpu.memory_space<vmem>>, vector<8x648xf32>
    %c4 = arith.constant 4 : index
    %c0_20 = arith.constant 0 : index
    %c0_21 = arith.constant 0 : index
    %22 = vector.load %arg3[%c4, %c0_20, %c0_21] : memref<9x16x8xf32, #tpu.memory_space<vmem>>, vector<1x16x8xf32>
    %23 = vector.shape_cast %22 : vector<1x16x8xf32> to vector<16x8xf32>
    %cst_22 = arith.constant dense<0.000000e+00> : vector<16x648xf32>
    %24 = tpu.matmul %23, %21, %cst_22 {dimension_numbers = #tpu.dot_dimension_numbers<[1], [0], [0], [1], [0, 0, 1, 1], [], []>} : vector<16x8xf32>, vector<8x648xf32>, vector<16x648xf32> -> vector<16x648xf32>
    %25 = arith.addf %20, %24 : vector<16x648xf32>
    %c0_23 = arith.constant 0 : index
    %c20 = arith.constant 20 : index
    %26 = vector.load %arg1[%c0_23, %c20] : memref<8x768xf32, #tpu.memory_space<vmem>>, vector<8x648xf32>
    %c5 = arith.constant 5 : index
    %c0_24 = arith.constant 0 : index
    %c0_25 = arith.constant 0 : index
    %27 = vector.load %arg3[%c5, %c0_24, %c0_25] : memref<9x16x8xf32, #tpu.memory_space<vmem>>, vector<1x16x8xf32>
    %28 = vector.shape_cast %27 : vector<1x16x8xf32> to vector<16x8xf32>
    %cst_26 = arith.constant dense<0.000000e+00> : vector<16x648xf32>
    %29 = tpu.matmul %28, %26, %cst_26 {dimension_numbers = #tpu.dot_dimension_numbers<[1], [0], [0], [1], [0, 0, 1, 1], [], []>} : vector<16x8xf32>, vector<8x648xf32>, vector<16x648xf32> -> vector<16x648xf32>
    %30 = arith.addf %25, %29 : vector<16x648xf32>
    %c0_27 = arith.constant 0 : index
    %c36 = arith.constant 36 : index
    %31 = vector.load %arg1[%c0_27, %c36] : memref<8x768xf32, #tpu.memory_space<vmem>>, vector<8x648xf32>
    %c6 = arith.constant 6 : index
    %c0_28 = arith.constant 0 : index
    %c0_29 = arith.constant 0 : index
    %32 = vector.load %arg3[%c6, %c0_28, %c0_29] : memref<9x16x8xf32, #tpu.memory_space<vmem>>, vector<1x16x8xf32>
    %33 = vector.shape_cast %32 : vector<1x16x8xf32> to vector<16x8xf32>
    %cst_30 = arith.constant dense<0.000000e+00> : vector<16x648xf32>
    %34 = tpu.matmul %33, %31, %cst_30 {dimension_numbers = #tpu.dot_dimension_numbers<[1], [0], [0], [1], [0, 0, 1, 1], [], []>} : vector<16x8xf32>, vector<8x648xf32>, vector<16x648xf32> -> vector<16x648xf32>
    %35 = arith.addf %30, %34 : vector<16x648xf32>
    %c0_31 = arith.constant 0 : index
    %c37 = arith.constant 37 : index
    %36 = vector.load %arg1[%c0_31, %c37] : memref<8x768xf32, #tpu.memory_space<vmem>>, vector<8x648xf32>
    %c7 = arith.constant 7 : index
    %c0_32 = arith.constant 0 : index
    %c0_33 = arith.constant 0 : index
    %37 = vector.load %arg3[%c7, %c0_32, %c0_33] : memref<9x16x8xf32, #tpu.memory_space<vmem>>, vector<1x16x8xf32>
    %38 = vector.shape_cast %37 : vector<1x16x8xf32> to vector<16x8xf32>
    %cst_34 = arith.constant dense<0.000000e+00> : vector<16x648xf32>
    %39 = tpu.matmul %38, %36, %cst_34 {dimension_numbers = #tpu.dot_dimension_numbers<[1], [0], [0], [1], [0, 0, 1, 1], [], []>} : vector<16x8xf32>, vector<8x648xf32>, vector<16x648xf32> -> vector<16x648xf32>
    %40 = arith.addf %35, %39 : vector<16x648xf32>
    %c0_35 = arith.constant 0 : index
    %c38 = arith.constant 38 : index
    %41 = vector.load %arg1[%c0_35, %c38] : memref<8x768xf32, #tpu.memory_space<vmem>>, vector<8x648xf32>
    %c8 = arith.constant 8 : index
    %c0_36 = arith.constant 0 : index
    %c0_37 = arith.constant 0 : index
    %42 = vector.load %arg3[%c8, %c0_36, %c0_37] : memref<9x16x8xf32, #tpu.memory_space<vmem>>, vector<1x16x8xf32>
    %43 = vector.shape_cast %42 : vector<1x16x8xf32> to vector<16x8xf32>
    %cst_38 = arith.constant dense<0.000000e+00> : vector<16x648xf32>
    %44 = tpu.matmul %43, %41, %cst_38 {dimension_numbers = #tpu.dot_dimension_numbers<[1], [0], [0], [1], [0, 0, 1, 1], [], []>} : vector<16x8xf32>, vector<8x648xf32>, vector<16x648xf32> -> vector<16x648xf32>
    %45 = arith.addf %40, %44 : vector<16x648xf32>
    %c0_39 = arith.constant 0 : index
    %c0_40 = arith.constant 0 : index
    %46 = vector.load %arg4[%c0_39, %c0_40] : memref<16x1xf32, #tpu.memory_space<vmem>>, vector<16x1xf32>
    %47 = vector.broadcast %46 : vector<16x1xf32> to vector<16x648xf32>
    %48 = arith.addf %45, %47 : vector<16x648xf32>
    %cst_41 = arith.constant 0.000000e+00 : f32
    %49 = vector.broadcast %cst_41 : f32 to vector<16x648xf32>
    %50 = arith.maximumf %48, %49 : vector<16x648xf32>
    %c0_42 = arith.constant 0 : index
    %c0_43 = arith.constant 0 : index
    %51 = vector.load %arg2[%c0_42, %c0_43] : memref<2x648xf32, #tpu.memory_space<vmem>>, vector<2x648xf32>
    %cst_44 = arith.constant dense<0.000000e+00> : vector<2x16xf32>
    %52 = tpu.matmul %51, %50, %cst_44 {dimension_numbers = #tpu.dot_dimension_numbers<[1], [1], [0], [0], [0, 0, 1, 0], [], []>} : vector<2x648xf32>, vector<16x648xf32>, vector<2x16xf32> -> vector<2x16xf32>
    %c0_45 = arith.constant 0 : index
    %c0_46 = arith.constant 0 : index
    %53 = vector.load %arg5[%c0_45, %c0_46] : memref<16x128xf32, #tpu.memory_space<vmem>>, vector<16x128xf32>
    %cst_47 = arith.constant dense<0.000000e+00> : vector<2x128xf32>
    %54 = tpu.matmul %52, %53, %cst_47 {dimension_numbers = #tpu.dot_dimension_numbers<[1], [0], [0], [1], [0, 0, 1, 1], [], []>} : vector<2x16xf32>, vector<16x128xf32>, vector<2x128xf32> -> vector<2x128xf32>
    %c0_48 = arith.constant 0 : index
    %c0_49 = arith.constant 0 : index
    %55 = vector.load %arg6[%c0_48, %c0_49] : memref<1x128xf32, #tpu.memory_space<vmem>>, vector<1x128xf32>
    %56 = vector.broadcast %55 : vector<1x128xf32> to vector<2x128xf32>
    %57 = arith.addf %54, %56 : vector<2x128xf32>
    %c0_50 = arith.constant 0 : index
    %c0_51 = arith.constant 0 : index
    %c0_52 = arith.constant 0 : index
    %58 = vector.load %arg7[%c0_50, %c0_51, %c0_52] : memref<1x2x128xf32, #tpu.memory_space<vmem>>, vector<1x2x128xf32>
    %59 = vector.shape_cast %58 : vector<1x2x128xf32> to vector<2x128xf32>
    %60 = vector.shape_cast %57 : vector<2x128xf32> to vector<1x2x128xf32>
    tpu.vector_store %arg7[%c0_50, %c0_51, %c0_52], %60 {strides = array<i32>} : memref<1x2x128xf32, #tpu.memory_space<vmem>>, vector<1x2x128xf32>,
    return
  }
  func.func @transform_0(%arg0: i32) -> (i32, i32) {
    %c0_i32 = arith.constant 0 : i32
    %c0_i32_0 = arith.constant 0 : i32
    return %arg0, %c0_i32 : i32, i32
  }
  func.func @transform_1(%arg0: i32) -> (i32, i32) {
    %c0_i32 = arith.constant 0 : i32
    %c0_i32_0 = arith.constant 0 : i32
    %c0_i32_1 = arith.constant 0 : i32
    return %c0_i32, %c0_i32_0 : i32, i32
  }
  func.func @transform_2(%arg0: i32) -> (i32, i32, i32) {
    %c0_i32 = arith.constant 0 : i32
    %c0_i32_0 = arith.constant 0 : i32
    %c0_i32_1 = arith.constant 0 : i32
    %c0_i32_2 = arith.constant 0 : i32
    return %c0_i32, %c0_i32_0, %c0_i32_1 : i32, i32, i32
  }
  func.func @transform_3(%arg0: i32) -> (i32, i32) {
    %c0_i32 = arith.constant 0 : i32
    %c0_i32_0 = arith.constant 0 : i32
    %c0_i32_1 = arith.constant 0 : i32
    return %c0_i32, %c0_i32_0 : i32, i32
  }
  func.func @transform_4(%arg0: i32) -> (i32, i32) {
    %c0_i32 = arith.constant 0 : i32
    %c0_i32_0 = arith.constant 0 : i32
    %c0_i32_1 = arith.constant 0 : i32
    return %c0_i32, %c0_i32_0 : i32, i32
  }
  func.func @transform_5(%arg0: i32) -> (i32, i32) {
    %c0_i32 = arith.constant 0 : i32
    %c0_i32_0 = arith.constant 0 : i32
    %c0_i32_1 = arith.constant 0 : i32
    return %c0_i32, %c0_i32_0 : i32, i32
  }
  func.func @transform_6(%arg0: i32) -> (i32, i32, i32) {
    %c0_i32 = arith.constant 0 : i32
    %c0_i32_0 = arith.constant 0 : i32
    %c0_i32_1 = arith.constant 0 : i32
    return %arg0, %c0_i32, %c0_i32_0 : i32, i32, i32
  }
}

</mosaic_0001>

<bundles_post_ra>
// kernel: cnn_forward.1
= control target key start
LH: loop header
LB: loop body
LE: loop exit
PB: predicated region body
PF: predicated region fallthrough
CT: control target
= control target key end

     0   :  { %s3101_s25 = smov 126   ;;  %vm65_vm0 = vcmask 64512   ;;  %v3102_v5 = vmov 0.0   ;;  %s3595_s0 = inlined_call_operand.vmem [shape: f32[8,768], index: 0, kind: input, shape index: {}]   ;;  %s3596_s1 = inlined_call_operand.vmem [shape: f32[2,648], index: 1, kind: input, shape index: {}]   ;;  %s3597_s2 = inlined_call_operand.vmem [shape: f32[9,16,8], index: 2, kind: input, shape index: {}]   ;;  %s3598_s3 = inlined_call_operand.vmem [shape: f32[16,1], index: 3, kind: input, shape index: {}]   ;;  %s3599_s4 = inlined_call_operand.vmem [shape: f32[16,128], index: 4, kind: input, shape index: {}]   ;;  %s3600_s5 = inlined_call_operand.vmem [shape: f32[1,128], index: 5, kind: input, shape index: {}]   ;;  %s3601_s6 = inlined_call_operand.hbm [shape: f32[1,2,128], index: 6, kind: output, shape index: {}]  }
   0x1   :  { %v3153_v0 = vld [vmem:[%s3595_s0 + $0x8] sm:$0xff]  ;;  %v3158_v1 = vld [vmem:[%s3595_s0] sm:$0xff]  ;;  %v3172_v3 = vld [vmem:[%s3595_s0 + $0x10] sm:$0xff]  ;;  %527 = vmatprep.mubr.f32.mxu0 %v3102_v5  ;;  %136 = vmatprep.mubr.f32.mxu1 %v3102_v5 }
   0x2   :  { %545 = vrot.lane.b32.xlu0 %v3153_v0, %s3101_s25  ;;  %543 = vrot.lane.b32.xlu1 %v3158_v1, %s3101_s25  ;;  %v3167_v2 = vld [vmem:[%s3595_s0 + $0x28] sm:$0xff]  ;;  %v3177_v4 = vld [vmem:[%s3595_s0 + $0x20] sm:$0xff] }
   0x3   :  { %463 = vmatprep.subr.mxu0 %v3167_v2  ;;  %v3184_v6 = vld [vmem:[%s3597_s2] sm:$0xff] }
   0x4   :  { %464 = vmatpush1.msra.mxu0 %v3177_v4 }
   0x5   :  { %11 = vsyncpa [#allocation3], 0  ;;  %2870 = vmatmul.mubr.msk.f32.vlgmr.msra.gmra.mrb[0].mxu0 %vm65_vm0, %v3184_v6  ;;  %v3197_v7 = vld [vmem:[%s3597_s2 + $0x8] sm:$0xff]  ;;  %s3103_s12 = smov 110   ;;  %s3104_s13 = smov 127   ;;  %v3219_v8 = vld [vmem:[%s3595_s0 + $0x18] sm:$0xff] }
   0x6   :  { %547 = vrot.lane.b32.xlu0 %v3172_v3, %s3101_s25  ;;  %551 = vrot.lane.b32.xlu1 %v3177_v4, %s3101_s25  ;;  %s3105_s16 = smov 109   ;;  %s3106_s0 = smov 108   ;;  %v2472_v9 = vld [vmem:[%s3598_s3] sm:$0xff]  ;;  %v2473_v10 = vld [vmem:[%s3598_s3 + $0x8] sm:$0xff]  ;;  %v3110_v11 = vmov 0   ;;  %vm555_vm1 = vcmask 1031168   ;;  %vm2953_vm9 = vmpackc.low %vm65_vm0, %vm65_vm0 }
   0x7   :  { %533 = vmatprep.mubr.f32.mxu0 %v3102_v5  ;;  %s3107_s17 = smov 92   ;;  %s3108_s18 = smov 91   ;;  %3074 = vset.pattern.permute.xlu0 %v3110_v11  ;;  %v3275_v17 = vld [vmem:[%s3597_s2 + $0x20] sm:$0xff]  ;;  %v3286_v22 = vld [vmem:[%s3597_s2 + $0x28] sm:$0xff]  ;;  %vm831_vm2 = vcmask 900096   ;;  %vm53_vm3 = vcmask 1039360  }
   0x8   :  { %s3109_s19 = smov 90   ;;  %3075 = vset.pattern.permute.xlu1 %v3110_v11  ;;  %v2858_v32 = vld [vmem:[%s3597_s2 + $0x10] sm:$0xff]  ;;  %v2859_v37 = vld [vmem:[%s3597_s2 + $0x18] sm:$0xff]  ;;  %vm1107_vm4 = vcmask 891904   ;;  %v3356_v51 = vld [vmem:[%s3597_s2 + $0x40] sm:$0xff]  ;;  %vm1383_vm5 = vcmask 883712  }
   0x9   :  { %2871 = vmatmul.mubr.msk.f32.gmra.mrb[2].mxu0 %vm65_vm0, %v3197_v7  ;;  %v3312_v34 = vld [vmem:[%s3597_s2 + $0x30] sm:$0xff]  ;;  %v3327_v39 = vld [vmem:[%s3597_s2 + $0x38] sm:$0xff]  ;;  %v3370_v55 = vld [vmem:[%s3597_s2 + $0x48] sm:$0xff]  ;;  %vm1659_vm6 = vcmask 752640   ;;  %vm1935_vm7 = vcmask 744448   ;;  %vm2211_vm8 = vcmask 736256  }
   0xa   :  { %553 = vrot.lane.b32.xlu0 %v3167_v2, %s3101_s25  ;;  %821 = vrot.lane.b32.xlu1 %v3153_v0, %s3103_s12  ;;  %vm3113_vm10 = vmmov 0   ;;  %vm2769_vm11 = vcmask 130048  }
   0xb   :  { %637 = vmatprep.mubr.f32.mxu0 %v3102_v5 }
   0xe   :  { %823 = vrot.lane.b32.xlu0 %v3172_v3, %s3103_s12  ;;  %819 = vrot.lane.b32.xlu1 %v3158_v1, %s3103_s12 }
  0x12   :  { %43 = vrot.lane.b32.xlu0 %v3153_v0, %s3104_s13  ;;  %45 = vrot.lane.b32.xlu1 %v3172_v3, %s3104_s13 }
  0x16   :  { %41 = vrot.lane.b32.xlu0 %v3158_v1, %s3104_s13  ;;  %827 = vrot.lane.b32.xlu1 %v3177_v4, %s3103_s12 }
  0x1a   :  { %829 = vrot.lane.b32.xlu0 %v3167_v2, %s3103_s12  ;;  %47 = vrot.lane.b32.xlu1 %v3219_v8, %s3104_s13 }
  0x1e   :  { %49 = vrot.lane.b32.xlu0 %v3177_v4, %s3104_s13  ;;  %1097 = vrot.lane.b32.xlu1 %v3153_v0, %s3105_s16 }
  0x22   :  { %1099 = vrot.lane.b32.xlu0 %v3172_v3, %s3105_s16  ;;  %1095 = vrot.lane.b32.xlu1 %v3158_v1, %s3105_s16 }
  0x26   :  { %51 = vrot.lane.b32.xlu0 %v3167_v2, %s3104_s13  ;;  %1103 = vrot.lane.b32.xlu1 %v3177_v4, %s3105_s16  ;;  %s3114_s13 = smov [#allocation2]  }
  0x27   :  { %s2850_s14 = sshll.u32 %s3114_s13, 4  ;;  %s2851_s14 = int_to_ptr.vmem [resolvable:$true] %s2850_s14 }
  0x28   :  { %p3082_p1 = scmp.lt.s32.totalorder %s2851_s14, %s2851_s14 }
  0x2a   :  { %1105 = vrot.lane.b32.xlu0 %v3167_v2, %s3105_s16  ;;  %1373 = vrot.lane.b32.xlu1 %v3153_v0, %s3106_s0 }
  0x2e   :  { %1375 = vrot.lane.b32.xlu0 %v3172_v3, %s3106_s0  ;;  %1371 = vrot.lane.b32.xlu1 %v3158_v1, %s3106_s0 }
  0x32   :  { %1379 = vrot.lane.b32.xlu0 %v3177_v4, %s3106_s0  ;;  %1381 = vrot.lane.b32.xlu1 %v3167_v2, %s3106_s0 }
  0x36   :  { %549 = vrot.lane.b32.xlu0 %v3219_v8, %s3101_s25  ;;  %1649 = vrot.lane.b32.xlu1 %v3153_v0, %s3107_s17 }
  0x3a   :  { %1651 = vrot.lane.b32.xlu0 %v3172_v3, %s3107_s17  ;;  %1647 = vrot.lane.b32.xlu1 %v3158_v1, %s3107_s17 }
  0x3e   :  { %825 = vrot.lane.b32.xlu0 %v3219_v8, %s3103_s12  ;;  %1655 = vrot.lane.b32.xlu1 %v3177_v4, %s3107_s17 }
  0x42   :  { %1657 = vrot.lane.b32.xlu0 %v3167_v2, %s3107_s17  ;;  %1101 = vrot.lane.b32.xlu1 %v3219_v8, %s3105_s16 }
  0x46   :  { %1925 = vrot.lane.b32.xlu0 %v3153_v0, %s3108_s18  ;;  %1927 = vrot.lane.b32.xlu1 %v3172_v3, %s3108_s18 }
  0x4a   :  { %1923 = vrot.lane.b32.xlu0 %v3158_v1, %s3108_s18  ;;  %1377 = vrot.lane.b32.xlu1 %v3219_v8, %s3106_s0 }
  0x4e   :  { %1931 = vrot.lane.b32.xlu0 %v3177_v4, %s3108_s18  ;;  %1933 = vrot.lane.b32.xlu1 %v3167_v2, %s3108_s18 }
  0x52   :  { %1653 = vrot.lane.b32.xlu0 %v3219_v8, %s3107_s17  ;;  %2201 = vrot.lane.b32.xlu1 %v3153_v0, %s3109_s19 }
  0x56   :  { %2203 = vrot.lane.b32.xlu0 %v3172_v3, %s3109_s19  ;;  %2199 = vrot.lane.b32.xlu1 %v3158_v1, %s3109_s19 }
  0x5a   :  { %1929 = vrot.lane.b32.xlu0 %v3219_v8, %s3108_s18  ;;  %2205 = vrot.lane.b32.xlu1 %v3219_v8, %s3109_s19 }
  0x5e   :  { %2207 = vrot.lane.b32.xlu0 %v3177_v4, %s3109_s19  ;;  %2209 = vrot.lane.b32.xlu1 %v3167_v2, %s3109_s19 }
  0x62   :  { %2476 = vperm.xlu0 %3074, %v2472_v9   ;;  %2481 = vperm.xlu1 %3075, %v2473_v10   ;;  %v3420_v9 = vld [vmem:[%s3597_s2 + $0x58] sm:$0xff] }
  0x74   :  { %v546_v12 = vpop.permute.xlu0 %545  ;;  %v544_v13 = vpop.permute.xlu1 %543 }
  0x75   :  { %v556_v18 = vsel %vm555_vm1, %v544_v13, %v546_v12 }
  0x78   :  { %v3266_v14 = vpop.permute.xlu0 %547  ;;  %v3268_v15 = vpop.permute.xlu1 %551 }
  0x79   :  { %v557_v16 = vsel %vm555_vm1, %v546_v12, %v3266_v14 }
  0x7a   :  { %573 = vmatprep.subr.mxu0 %v557_v16 }
  0x7b   :  { %574 = vmatpush1.msra.mxu0 %v556_v18 }
  0x7c   :  { %v554_v19 = vpop.permute.xlu0 %553  ;;  %2874 = vmatmul.mubr.msk.f32.vlgmr.msra.gmra.mrb[4].mxu0 %vm65_vm0, %v3275_v17  ;;  %v822_v20 = vpop.permute.xlu1 %821 }
  0x7d   :  { %v560_v21 = vsel %vm555_vm1, %v3268_v15, %v554_v19  ;;  %727 = vmatprep.subr.mxu0 %v554_v19  ;;  %643 = vmatprep.mubr.f32.mxu0 %v3102_v5  ;;  %v3455_v19 = vld [vmem:[%s3597_s2 + $0x60] sm:$0xff] }
  0x7e   :  { %728 = vmatpush1.msra.mxu0 %v560_v21 }
  0x80   :  { %v3288_v23 = vpop.permute.xlu0 %823  ;;  %2875 = vmatmul.mubr.msk.f32.gmra.mrb[6].mxu0 %vm65_vm0, %v3286_v22  ;;  %v820_v24 = vpop.permute.xlu1 %819 }
  0x81   :  { %791 = vmatprep.mubr.f32.mxu0 %v3102_v5  ;;  %v833_v25 = vsel %vm831_vm2, %v822_v20, %v3288_v23  ;;  %v832_v26 = vsel %vm831_vm2, %v820_v24, %v822_v20 }
  0x82   :  { %849 = vmatprep.subr.mxu0 %v833_v25  ;;  %v3470_v25 = vld [vmem:[%s3597_s2 + $0x68] sm:$0xff] }
  0x84   :  { %v44_v27 = vpop.permute.xlu0 %43  ;;  %2878 = vmatmul.mubr.msk.f32.vlgmr.msra.gmra.mrb[0].mxu0 %vm65_vm0, %v3275_v17  ;;  %v46_v28 = vpop.permute.xlu1 %45 }
  0x85   :  { %850 = vmatpush1.msra.mxu0 %v832_v26  ;;  %797 = vmatprep.mubr.f32.mxu0 %v3102_v5  ;;  %v55_v29 = vsel %vm53_vm3, %v44_v27, %v46_v28 }
  0x86   :  { %72 = vmatprep.subr.mxu1 %v55_v29 }
  0x88   :  { %v42_v30 = vpop.permute.xlu0 %41  ;;  %2879 = vmatmul.mubr.msk.f32.gmra.mrb[2].mxu0 %vm65_vm0, %v3286_v22  ;;  %v3302_v31 = vpop.permute.xlu1 %827 }
  0x89   :  { %v54_v33 = vsel %vm53_vm3, %v42_v30, %v44_v27  ;;  %913 = vmatprep.mubr.f32.mxu0 %v3102_v5 }
  0x8a   :  { %73 = vmatpush1.msra.mxu1 %v54_v33 }
  0x8b   :  { %2860 = vmatmul.mubr.msk.f32.vlgmr.msra.gmra.mrb[0].mxu1 %vm65_vm0, %v2858_v32 }
  0x8c   :  { %v830_v35 = vpop.permute.xlu0 %829  ;;  %2882 = vmatmul.mubr.msk.f32.vlgmr.msra.gmra.mrb[4].mxu0 %vm65_vm0, %v3312_v34  ;;  %v48_v36 = vpop.permute.xlu1 %47  ;;  %142 = vmatprep.mubr.f32.mxu1 %v3102_v5 }
  0x8d   :  { %v836_v38 = vsel %vm831_vm2, %v3302_v31, %v830_v35  ;;  %1003 = vmatprep.subr.mxu0 %v830_v35  ;;  %919 = vmatprep.mubr.f32.mxu0 %v3102_v5  ;;  %v56_v43 = vsel %vm53_vm3, %v46_v28, %v48_v36  ;;  %v2912_v35 = vld [vmem:[%s3597_s2 + $0x70] sm:$0xff] }
  0x8e   :  { %1004 = vmatpush1.msra.mxu0 %v836_v38 }
  0x8f   :  { %2861 = vmatmul.mubr.msk.f32.gmra.mrb[2].mxu1 %vm65_vm0, %v2859_v37 }
  0x90   :  { %v50_v40 = vpop.permute.xlu0 %49  ;;  %2883 = vmatmul.mubr.msk.f32.gmra.mrb[6].mxu0 %vm65_vm0, %v3327_v39  ;;  %v1098_v41 = vpop.permute.xlu1 %1097  ;;  %213 = vmatprep.mubr.f32.mxu1 %v3102_v5 }
  0x91   :  { %v57_v42 = vsel %vm53_vm3, %v48_v36, %v50_v40  ;;  %1067 = vmatprep.mubr.f32.mxu0 %v3102_v5 }
  0x92   :  { %149 = vmatprep.subr.mxu1 %v57_v42 }
  0x93   :  { %150 = vmatpush1.msra.mxu1 %v56_v43 }
  0x94   :  { %v3336_v44 = vpop.permute.xlu0 %1099  ;;  %2862 = vmatmul.mubr.msk.f32.vlgmr.msra.gmra.mrb[4].mxu1 %vm65_vm0, %v2858_v32  ;;  %2886 = vmatmul.mubr.msk.f32.vlgmr.msra.gmra.mrb[0].mxu0 %vm65_vm0, %v3312_v34  ;;  %v1096_v45 = vpop.permute.xlu1 %1095 }
  0x95   :  { %v1108_v46 = vsel %vm1107_vm4, %v1096_v45, %v1098_v41  ;;  %v1109_v47 = vsel %vm1107_vm4, %v1098_v41, %v3336_v44  ;;  %219 = vmatprep.mubr.f32.mxu1 %v3102_v5  ;;  %1073 = vmatprep.mubr.f32.mxu0 %v3102_v5 }
  0x96   :  { %1125 = vmatprep.subr.mxu0 %v1109_v47 }
  0x97   :  { %1126 = vmatpush1.msra.mxu0 %v1108_v46 }
  0x98   :  { %v52_v48 = vpop.permute.xlu0 %51  ;;  %2863 = vmatmul.mubr.msk.f32.gmra.mrb[6].mxu1 %vm65_vm0, %v2859_v37  ;;  %2887 = vmatmul.mubr.msk.f32.gmra.mrb[2].mxu0 %vm65_vm0, %v3327_v39  ;;  %v3349_v49 = vpop.permute.xlu1 %1103 }
  0x99   :  { %v58_v50 = vsel %vm53_vm3, %v50_v40, %v52_v48  ;;  %226 = vmatprep.subr.mxu1 %v52_v48  ;;  %290 = vmatprep.mubr.f32.mxu1 %v3102_v5  ;;  %v2913_v40 = vld [vmem:[%s3597_s2 + $0x78] sm:$0xff] }
  0x9a   :  { %227 = vmatpush1.msra.mxu1 %v58_v50  ;;  %1189 = vmatprep.mubr.f32.mxu0 %v3102_v5 }
  0x9b   :  { %309 = vmatprep.subr.mxu1 %v3153_v0 }
  0x9c   :  { %v1106_v52 = vpop.permute.xlu0 %1105  ;;  %2864 = vmatmul.mubr.msk.f32.vlgmr.msra.gmra.mrb[8].mxu1 %vm65_vm0, %v2858_v32  ;;  %2890 = vmatmul.mubr.msk.f32.vlgmr.msra.gmra.mrb[4].mxu0 %vm65_vm0, %v3356_v51  ;;  %v1374_v53 = vpop.permute.xlu1 %1373 }
  0x9d   :  { %v1112_v54 = vsel %vm1107_vm4, %v3349_v49, %v1106_v52  ;;  %296 = vmatprep.mubr.f32.mxu1 %v3102_v5  ;;  %1195 = vmatprep.mubr.f32.mxu0 %v3102_v5 }
  0x9e   :  { %1279 = vmatprep.subr.mxu0 %v1106_v52  ;;  %310 = vmatpush1.msra.mxu1 %v3158_v1  ;;  %v3404_v1 = vld [vmem:[%s3597_s2 + $0x50] sm:$0xff]  ;;  %v2921_v52 = vld [vmem:[%s3597_s2 + $0x88] sm:$0xff] }
  0x9f   :  { %1280 = vmatpush1.msra.mxu0 %v1112_v54  ;;  %386 = vmatprep.subr.mxu1 %v3219_v8 }
  0xa0   :  { %v3374_v56 = vpop.permute.xlu0 %1375  ;;  %2865 = vmatmul.mubr.msk.f32.gmra.mrb[10].mxu1 %vm65_vm0, %v2859_v37  ;;  %2891 = vmatmul.mubr.msk.f32.gmra.mrb[6].mxu0 %vm65_vm0, %v3370_v55  ;;  %v1372_v57 = vpop.permute.xlu1 %1371 }
  0xa1   :  { %373 = vmatprep.mubr.f32.mxu1 %v3102_v5  ;;  %1343 = vmatprep.mubr.f32.mxu0 %v3102_v5  ;;  %v1385_v58 = vsel %vm1383_vm5, %v1374_v53, %v3374_v56  ;;  %v1384_v59 = vsel %vm1383_vm5, %v1372_v57, %v1374_v53  ;;  %v3111_v53 = vmov 1983009808  }
  0xa2   :  { %1401 = vmatprep.subr.mxu0 %v1385_v58  ;;  %v2514_v54 = vunpack.c.l.s4 %v3111_v53 }
  0xa4   :  { %v3384_v60 = vpop.permute.xlu0 %1379  ;;  %2866 = vmatmul.mubr.msk.f32.vlgmr.msra.gmra.mrb[0].mxu1 %vm65_vm0, %v3184_v6  ;;  %2894 = vmatmul.mubr.msk.f32.vlgmr.msra.gmra.mrb[0].mxu0 %vm65_vm0, %v3356_v51  ;;  %v1382_v61 = vpop.permute.xlu1 %1381 }
  0xa5   :  { %379 = vmatprep.mubr.f32.mxu1 %v3102_v5  ;;  %1349 = vmatprep.mubr.f32.mxu0 %v3102_v5  ;;  %v1388_v2 = vsel %vm1383_vm5, %v3384_v60, %v1382_v61 }
  0xa6   :  { %1402 = vmatpush1.msra.mxu0 %v1384_v59  ;;  %387 = vmatpush1.msra.mxu1 %v3172_v3  ;;  %v2508_v59 = vld [vmem:[%s3596_s1] sm:$0xff] }
  0xa7   :  { %1555 = vmatprep.subr.mxu0 %v1382_v61 }
  0xa8   :  { %v550_v62 = vpop.permute.xlu0 %549  ;;  %2867 = vmatmul.mubr.msk.f32.gmra.mrb[2].mxu1 %vm65_vm0, %v3197_v7  ;;  %2895 = vmatmul.mubr.msk.f32.gmra.mrb[2].mxu0 %vm65_vm0, %v3370_v55  ;;  %v1650_v63 = vpop.permute.xlu1 %1649 }
  0xa9   :  { %v559_v0 = vsel %vm555_vm1, %v550_v62, %v3268_v15  ;;  %450 = vmatprep.mubr.f32.mxu1 %v3102_v5  ;;  %1465 = vmatprep.mubr.f32.mxu0 %v3102_v5  ;;  %v558_v3 = vsel %vm555_vm1, %v3266_v14, %v550_v62  ;;  %v2512_v62 = vcombine.high %v2508_v59, %v2508_v59 }
  0xaa   :  { %650 = vmatprep.subr.mxu1 %v559_v0 }
  0xac   :  { %v3410_v4 = vpop.permute.xlu0 %1651  ;;  %2868 = vmatmul.mubr.msk.f32.vlgmr.msra.gmra.mrb[4].mxu1 %vm65_vm0, %v3184_v6  ;;  %2898 = vmatmul.mubr.msk.f32.vlgmr.msra.gmra.mrb[4].mxu0 %vm65_vm0, %v3404_v1  ;;  %v1648_v8 = vpop.permute.xlu1 %1647 }
  0xad   :  { %651 = vmatpush1.msra.mxu1 %v558_v3  ;;  %456 = vmatprep.mubr.f32.mxu1 %v3102_v5  ;;  %v1661_v10 = vsel %vm1659_vm6, %v1650_v63, %v3410_v4  ;;  %v1660_v13 = vsel %vm1659_vm6, %v1648_v8, %v1650_v63 }
  0xae   :  { %1471 = vmatprep.mubr.f32.mxu0 %v3102_v5  ;;  %1556 = vmatpush1.msra.mxu0 %v1388_v2 }
  0xaf   :  { %1677 = vmatprep.subr.mxu0 %v1661_v10 }
  0xb0   :  { %v826_v6 = vpop.permute.xlu0 %825  ;;  %2869 = vmatmul.mubr.msk.f32.gmra.mrb[6].mxu1 %vm65_vm0, %v3197_v7  ;;  %2899 = vmatmul.mubr.msk.f32.gmra.mrb[6].mxu0 %vm65_vm0, %v3420_v9  ;;  %v1656_v11 = vpop.permute.xlu1 %1655 }
  0xb1   :  { %v835_v12 = vsel %vm831_vm2, %v826_v6, %v3302_v31  ;;  %714 = vmatprep.mubr.f32.mxu1 %v3102_v5  ;;  %1619 = vmatprep.mubr.f32.mxu0 %v3102_v5  ;;  %v834_v14 = vsel %vm831_vm2, %v3288_v23, %v826_v6 }
  0xb2   :  { %926 = vmatprep.subr.mxu1 %v835_v12 }
  0xb4   :  { %v1658_v15 = vpop.permute.xlu0 %1657  ;;  %2876 = vmatmul.mubr.msk.f32.vlgmr.msra.gmra.mrb[4].mxu1 %vm65_vm0, %v3275_v17  ;;  %2902 = vmatmul.mubr.msk.f32.vlgmr.msra.gmra.mrb[0].mxu0 %vm65_vm0, %v3404_v1  ;;  %v1102_v7 = vpop.permute.xlu1 %1101 }
  0xb5   :  { %927 = vmatpush1.msra.mxu1 %v834_v14  ;;  %v1111_v16 = vsel %vm1107_vm4, %v1102_v7, %v3349_v49  ;;  %720 = vmatprep.mubr.f32.mxu1 %v3102_v5  ;;  %v1664_v20 = vsel %vm1659_vm6, %v1656_v11, %v1658_v15  ;;  %v1110_v21 = vsel %vm1107_vm4, %v3336_v44, %v1102_v7  ;;  %v2920_v49 = vld [vmem:[%s3597_s2 + $0x80] sm:$0xff] }
  0xb6   :  { %1202 = vmatprep.subr.mxu1 %v1111_v16  ;;  %1625 = vmatprep.mubr.f32.mxu0 %v3102_v5 }
  0xb7   :  { %1678 = vmatpush1.msra.mxu0 %v1660_v13 }
  0xb8   :  { %v1926_v18 = vpop.permute.xlu0 %1925  ;;  %2877 = vmatmul.mubr.msk.f32.gmra.mrb[6].mxu1 %vm65_vm0, %v3286_v22  ;;  %2903 = vmatmul.mubr.msk.f32.gmra.mrb[2].mxu0 %vm65_vm0, %v3420_v9  ;;  %v3448_v17 = vpop.permute.xlu1 %1927 }
  0xb9   :  { %990 = vmatprep.mubr.f32.mxu1 %v3102_v5  ;;  %1741 = vmatprep.mubr.f32.mxu0 %v3102_v5  ;;  %v1937_v26 = vsel %vm1935_vm7, %v1926_v18, %v3448_v17 }
  0xba   :  { %1831 = vmatprep.subr.mxu0 %v1658_v15 }
  0xbc   :  { %v1924_v22 = vpop.permute.xlu0 %1923  ;;  %2884 = vmatmul.mubr.msk.f32.vlgmr.msra.gmra.mrb[4].mxu1 %vm65_vm0, %v3312_v34  ;;  %2906 = vmatmul.mubr.msk.f32.vlgmr.msra.gmra.mrb[4].mxu0 %vm65_vm0, %v3455_v19  ;;  %v1378_v23 = vpop.permute.xlu1 %1377 }
  0xbd   :  { %1203 = vmatpush1.msra.mxu1 %v1110_v21  ;;  %v1387_v24 = vsel %vm1383_vm5, %v1378_v23, %v3384_v60  ;;  %996 = vmatprep.mubr.f32.mxu1 %v3102_v5  ;;  %v1936_v29 = vsel %vm1935_vm7, %v1924_v22, %v1926_v18  ;;  %v1386_v30 = vsel %vm1383_vm5, %v3374_v56, %v1378_v23  ;;  %v2515_v56 = vunpack.c.0.s8 %v2514_v54 }
  0xbe   :  { %1478 = vmatprep.subr.mxu1 %v1387_v24  ;;  %1747 = vmatprep.mubr.f32.mxu0 %v3102_v5 }
  0xbf   :  { %1832 = vmatpush1.msra.mxu0 %v1664_v20 }
  0xc0   :  { %v1932_v27 = vpop.permute.xlu0 %1931  ;;  %2885 = vmatmul.mubr.msk.f32.gmra.mrb[6].mxu1 %vm65_vm0, %v3327_v39  ;;  %2907 = vmatmul.mubr.msk.f32.gmra.mrb[6].mxu0 %vm65_vm0, %v3470_v25  ;;  %v1934_v28 = vpop.permute.xlu1 %1933 }
  0xc1   :  { %1266 = vmatprep.mubr.f32.mxu1 %v3102_v5  ;;  %1895 = vmatprep.mubr.f32.mxu0 %v3102_v5  ;;  %v1940_v38 = vsel %vm1935_vm7, %v1932_v27, %v1934_v28 }
  0xc2   :  { %1953 = vmatprep.subr.mxu0 %v1937_v26 }
  0xc4   :  { %v1654_v31 = vpop.permute.xlu0 %1653  ;;  %2892 = vmatmul.mubr.msk.f32.vlgmr.msra.gmra.mrb[4].mxu1 %vm65_vm0, %v3356_v51  ;;  %2910 = vmatmul.mubr.msk.f32.vlgmr.msra.gmra.mrb[0].mxu0 %vm65_vm0, %v3455_v19  ;;  %v2202_v32 = vpop.permute.xlu1 %2201 }
  0xc5   :  { %1479 = vmatpush1.msra.mxu1 %v1386_v30  ;;  %v1663_v33 = vsel %vm1659_vm6, %v1654_v31, %v1656_v11  ;;  %1272 = vmatprep.mubr.f32.mxu1 %v3102_v5  ;;  %v1662_v37 = vsel %vm1659_vm6, %v3410_v4, %v1654_v31 }
  0xc6   :  { %1754 = vmatprep.subr.mxu1 %v1663_v33  ;;  %1901 = vmatprep.mubr.f32.mxu0 %v3102_v5 }
  0xc7   :  { %1954 = vmatpush1.msra.mxu0 %v1936_v29 }
  0xc8   :  { %v2204_v34 = vpop.permute.xlu0 %2203  ;;  %2893 = vmatmul.mubr.msk.f32.gmra.mrb[6].mxu1 %vm65_vm0, %v3370_v55  ;;  %2911 = vmatmul.mubr.msk.f32.gmra.mrb[2].mxu0 %vm65_vm0, %v3470_v25  ;;  %v2200_v36 = vpop.permute.xlu1 %2199  ;;  %v2516_v55 = vlaneseq }
  0xc9   :  { %1542 = vmatprep.mubr.f32.mxu1 %v3102_v5  ;;  %2017 = vmatprep.mubr.f32.mxu0 %v3102_v5  ;;  %v2213_v42 = vsel %vm2211_vm8, %v2202_v32, %v2204_v34  ;;  %v2212_v45 = vsel %vm2211_vm8, %v2200_v36, %v2202_v32 }
  0xca   :  { %2107 = vmatprep.subr.mxu0 %v1934_v28  ;;  %v2517_v57 = vshrl.u32 %v2516_v55, 7 }
  0xcc   :  { %v1930_v39 = vpop.permute.xlu0 %1929  ;;  %2900 = vmatmul.mubr.msk.f32.vlgmr.msra.gmra.mrb[4].mxu1 %vm65_vm0, %v3404_v1  ;;  %2914 = vmatmul.mubr.msk.f32.vlgmr.msra.gmra.mrb[4].mxu0 %vm65_vm0, %v2912_v35  ;;  %v2206_v43 = vpop.permute.xlu1 %2205  ;;  %v2518_v58 = vsub.s32 %v2515_v56, %v2517_v57 }
  0xcd   :  { %1755 = vmatpush1.msra.mxu1 %v1662_v37  ;;  %1548 = vmatprep.mubr.f32.mxu1 %v3102_v5  ;;  %v1939_v41 = vsel %vm1935_vm7, %v1930_v39, %v1932_v27  ;;  %v1938_v46 = vsel %vm1935_vm7, %v3448_v17, %v1930_v39  ;;  %v2214_v51 = vsel %vm2211_vm8, %v2204_v34, %v2206_v43 }
  0xce   :  { %2023 = vmatprep.mubr.f32.mxu0 %v3102_v5  ;;  %2030 = vmatprep.subr.mxu1 %v1939_v41  ;;  %v3557_v60 = vrot.slane %v2508_v59, %v2518_v58  ;;  %v3561_v63 = vrot.slane %v2512_v62, %v2518_v58 }
  0xcf   :  { %2108 = vmatpush1.msra.mxu0 %v1940_v38 }
  0xd0   :  { %2901 = vmatmul.mubr.msk.f32.gmra.mrb[6].mxu1 %vm65_vm0, %v3420_v9  ;;  %2915 = vmatmul.mubr.msk.f32.gmra.mrb[6].mxu0 %vm65_vm0, %v2913_v40  ;;  %v2208_v44 = vpop.permute.xlu0 %2207  ;;  %v2210_v48 = vpop.permute.xlu1 %2209  ;;  %v2527_v61 = vcombine.high %v3557_v60, %v3557_v60 }
  0xd1   :  { %1818 = vmatprep.mubr.f32.mxu1 %v3102_v5  ;;  %2171 = vmatprep.mubr.f32.mxu0 %v3102_v5  ;;  %v2215_v47 = vsel %vm2211_vm8, %v2206_v43, %v2208_v44  ;;  %v2216_v50 = vsel %vm2211_vm8, %v2208_v44, %v2210_v48 }
  0xd2   :  { %2229 = vmatprep.subr.mxu0 %v2213_v42 }
  0xd4   :  { %2908 = vmatmul.mubr.msk.f32.vlgmr.msra.gmra.mrb[4].mxu1 %vm65_vm0, %v3455_v19  ;;  %2918 = vmatmul.mubr.msk.f32.vlgmr.msra.gmra.mrb[0].mxu0 %vm65_vm0, %v2912_v35 }
  0xd5   :  { %2031 = vmatpush1.msra.mxu1 %v1938_v46  ;;  %1824 = vmatprep.mubr.f32.mxu1 %v3102_v5 }
  0xd6   :  { %2177 = vmatprep.mubr.f32.mxu0 %v3102_v5  ;;  %2230 = vmatpush1.msra.mxu0 %v2212_v45 }
  0xd7   :  { %2306 = vmatprep.subr.mxu1 %v2215_v47  ;;  %2383 = vmatprep.subr.mxu0 %v2210_v48 }
  0xd8   :  { %2909 = vmatmul.mubr.msk.f32.gmra.mrb[6].mxu1 %vm65_vm0, %v3470_v25  ;;  %2919 = vmatmul.mubr.msk.f32.gmra.mrb[2].mxu0 %vm65_vm0, %v2913_v40 }
  0xd9   :  { %2094 = vmatprep.mubr.f32.mxu1 %v3102_v5  ;;  %2293 = vmatprep.mubr.f32.mxu0 %v3102_v5 }
  0xdc   :  { %2916 = vmatmul.mubr.msk.f32.vlgmr.msra.gmra.mrb[4].mxu1 %vm65_vm0, %v2912_v35  ;;  %2922 = vmatmul.mubr.msk.f32.vlgmr.msra.gmra.mrb[4].mxu0 %vm65_vm0, %v2920_v49 }
  0xdd   :  { %2307 = vmatpush1.msra.mxu1 %v2214_v51  ;;  %2100 = vmatprep.mubr.f32.mxu1 %v3102_v5 }
  0xde   :  { %2299 = vmatprep.mubr.f32.mxu0 %v3102_v5  ;;  %2384 = vmatpush1.msra.mxu0 %v2216_v50 }
  0xe0   :  { %2917 = vmatmul.mubr.msk.f32.gmra.mrb[6].mxu1 %vm65_vm0, %v2913_v40  ;;  %2923 = vmatmul.mubr.msk.f32.gmra.mrb[6].mxu0 %vm65_vm0, %v2921_v52 }
  0xe1   :  { %2370 = vmatprep.mubr.f32.mxu1 %v3102_v5  ;;  %2447 = vmatprep.mubr.f32.mxu0 %v3102_v5  ;;  %v2477_v14 = vpop.permute.xlu0 %2476  ;;  %v2482_v7 = vpop.permute.xlu1 %2481 }
  0xe4   :  { %2924 = vmatmul.mubr.msk.f32.vlgmr.msra.gmra.mrb[4].mxu1 %vm65_vm0, %v2920_v49  ;;  %2926 = vmatmul.mubr.msk.f32.vlgmr.msra.gmra.mrb[0].mxu0 %vm65_vm0, %v2920_v49 }
  0xe5   :  { %2376 = vmatprep.mubr.f32.mxu1 %v3102_v5  ;;  %2453 = vmatprep.mubr.f32.mxu0 %v3102_v5 }
  0xe8   :  { %2925 = vmatmul.mubr.msk.f32.gmra.mrb[6].mxu1 %vm65_vm0, %v2921_v52  ;;  %2927 = vmatmul.mubr.msk.f32.gmra.mrb[2].mxu0 %vm65_vm0, %v2921_v52 }
  0xe9   :  { %2614 = vmatprep.mubr.f32.mxu1 %v2527_v61  ;;  %v2528_v61 = vcombine.high %v3561_v63, %v3561_v63 }
 0x16f   :  { %v292_v0 = vpop.f32.mrb[8].mxu1 }
 0x170   :  { %v294_v1 = vpop.f32.mrb[9].mxu1 }
 0x173   :  { %v298_v2 = vpop.f32.mrb[10].mxu1 }
 0x174   :  { %v300_v3 = vpop.f32.mrb[11].mxu1 }
 0x177   :  { %v375_v4 = vpop.f32.mrb[0].mxu1 }
 0x178   :  { %v377_v8 = vpop.f32.mrb[1].mxu1 }
 0x17b   :  { %v381_v9 = vpop.f32.mrb[2].mxu1 }
 0x17c   :  { %v383_v10 = vpop.f32.mrb[3].mxu1 }
 0x1af   :  { %v2295_v6 = vpop.f32.mrb[4].mxu0 }
 0x1b0   :  { %v2960_v11 = vadd.f32 %v2295_v6, %v375_v4  ;;  %v2297_v12 = vpop.f32.mrb[5].mxu0 }
 0x1b1   :  { %v2961_v13 = vadd.f32 %v2297_v12, %v377_v8 }
 0x1b2   :  { %v2484_v16 = vadd.f32 %v2960_v11, %v2477_v14 }
 0x1b3   :  { %v2301_v15 = vpop.f32.mrb[6].mxu0  ;;  %v2485_v20 = vadd.f32 %v2961_v13, %v2477_v14 }
 0x1b4   :  { %v2962_v18 = vadd.f32 %v2301_v15, %v381_v9  ;;  %v2303_v17 = vpop.f32.mrb[7].mxu0  ;;  %v2496_v25 = vmax.f32 %v2484_v16, 0.0  ;;  %v2932_v9 = vld [vmem:[%s3600_s5] ss:$0 sm:$0xff] }
 0x1b5   :  { %v2963_v19 = vadd.f32 %v2303_v17, %v383_v10  ;;  %v2497_v31 = vmax.f32 %v2485_v20, 0.0 }
 0x1b6   :  { %v2490_v21 = vadd.f32 %v2962_v18, %v2482_v7 }
 0x1b7   :  { %v2372_v22 = vpop.f32.mrb[4].mxu1  ;;  %v2449_v23 = vpop.f32.mrb[0].mxu0  ;;  %v2491_v24 = vadd.f32 %v2963_v19, %v2482_v7 }
 0x1b8   :  { %v2502_v26 = vmax.f32 %v2490_v21, 0.0  ;;  %v2964_v27 = vadd.f32 %v2449_v23, %v292_v0  ;;  %v2374_v28 = vpop.f32.mrb[5].mxu1  ;;  %v2451_v29 = vpop.f32.mrb[1].mxu0  ;;  %v2486_v33 = vadd.f32 %v2477_v14, %v2372_v22 }
 0x1b9   :  { %v2965_v30 = vadd.f32 %v2451_v29, %v294_v1  ;;  %v2503_v32 = vmax.f32 %v2491_v24, 0.0  ;;  %v2487_v35 = vadd.f32 %v2477_v14, %v2374_v28  ;;  %v2928_v0 = vld.sshfl [vmem:[%s3596_s1 + $0x8] sm:$0x33 pattern:$0x76325410] }
 0x1ba   :  { %v2946_v34 = vpack.c.bf16 %v2502_v26, %v2496_v25  ;;  %v2488_v39 = vadd.f32 %v2964_v27, %v2477_v14  ;;  %v2498_v47 = vmax.f32 %v2486_v33, 0.0  ;;  %v2536_v1 = vcombine.high %v2928_v0, %v2928_v0 }
 0x1bb   :  { %v2378_v36 = vpop.f32.mrb[6].mxu1  ;;  %v2455_v37 = vpop.f32.mrb[2].mxu0  ;;  %v2944_v38 = vpack.c.bf16 %v2503_v32, %v2497_v31  ;;  %v2489_v44 = vadd.f32 %v2965_v30, %v2477_v14  ;;  %v2499_v50 = vmax.f32 %v2487_v35, 0.0 }
 0x1bc   :  { %v2492_v40 = vadd.f32 %v2482_v7, %v2378_v36  ;;  %v2966_v41 = vadd.f32 %v2455_v37, %v298_v2  ;;  %v2380_v42 = vpop.f32.mrb[7].mxu1  ;;  %v2457_v43 = vpop.f32.mrb[3].mxu0  ;;  %v2500_v53 = vmax.f32 %v2488_v39, 0.0  ;;  %v3112_v2 = vmov 0.0|0.0  }
 0x1bd   :  { %v2493_v45 = vadd.f32 %v2482_v7, %v2380_v42  ;;  %v2967_v46 = vadd.f32 %v2457_v43, %v300_v3  ;;  %2945 = vmatprep.subr.bf16.mxu1 %v2944_v38  ;;  %v2501_v56 = vmax.f32 %v2489_v44, 0.0  ;;  %v2760_v3 = vld [vmem:[%s3599_s4] sm:$0xff] }
 0x1be   :  { %v2504_v48 = vmax.f32 %v2492_v40, 0.0  ;;  %v2494_v49 = vadd.f32 %v2966_v41, %v2482_v7  ;;  %2947 = vmatpush1.bf16.xpose.msra.mxu1 %v2946_v34 }
 0x1bf   :  { %v2505_v51 = vmax.f32 %v2493_v45, 0.0  ;;  %v2495_v52 = vadd.f32 %v2967_v46, %v2482_v7 }
 0x1c0   :  { %v2950_v54 = vpack.c.bf16 %v2504_v48, %v2498_v47  ;;  %v2506_v55 = vmax.f32 %v2494_v49, 0.0 }
 0x1c1   :  { %v2948_v57 = vpack.c.bf16 %v2505_v51, %v2499_v50  ;;  %v2507_v58 = vmax.f32 %v2495_v52, 0.0 }
 0x1c2   :  { %v2955_v59 = vpack.c.bf16 %v2506_v55, %v2500_v53 }
 0x1c3   :  { %v2952_v62 = vpack.c.bf16 %v2507_v58, %v2501_v56  ;;  %2949 = vmatprep.subr.bf16.mxu1 %v2948_v57 }
 0x1c5   :  { %2615 = vmatmul.mubr.f32.vlgmr.msra.gmra.mrb[12].mxu1 %v3557_v60  ;;  %v2761_v60 = vld [vmem:[%s3599_s4 + $0x8] sm:$0xff]  ;;  %s3077_s4 = scalar_lea.vmem %s2851_s14, 32 }
 0x1c6   :  { %2951 = vmatpush1.bf16.xpose.msra.mxu1 %v2950_v54  ;;  %2684 = vmatprep.mubr.f32.mxu1 %v2528_v61  ;;  %v2958_v4 = vpack.c.bf16 %v2761_v60, %v2760_v3  ;;  %p3078_p0 = scmp.ne.s32.totalorder %s2851_s14, %s3077_s4  ;;  %p3083_p2 = scmp.lt.s32.totalorder %s3077_s4, %s3077_s4 }
 0x1c7   :  { %2954 = vmatprep.subr.msk.bf16.mxu1 %vm2953_vm9, %v2952_v62 }
 0x1c8   :  { %p3084_p3 = por %p3083_p2, %p3082_p1 }
 0x1ca   :  { %p3085_p4 = pnand %p3084_p3, %p3078_p0 }
 0x1cd   :  { %2685 = vmatmul.mubr.f32.vlgmr.msra.gmra.mrb[12].mxu1 %v3561_v63 }
 0x1ce   :  { %2956 = vmatpush1.bf16.xpose.msra.mxu1 %v2955_v59  ;;  %2931 = vmatprep.mubr.msk.f32.mxu1 %vm65_vm0, %v2536_v1 }
 0x1cf   :  { %2957 = vmatprep.subr.bf16.mxu1 %v3112_v2 }
 0x1d5   :  { %2755 = vmatmul.mubr.f32.vlgmr.msra.gmra.mrb[12].mxu1 %v2928_v0 }
 0x1d6   :  { %2959 = vmatpush3.bf16.msra.mxu1 %v2958_v4  ;;  %2941 = vmatprep.mubr.msk.f32.mxu1 %vm3113_vm10, %v3102_v5 }
 0x2a8   :  { %v2756_v63 = vpop.f32.mrb[12].mxu1 }
 0x2a9   :  { %v2758_v8 = vpop.f32.mrb[13].mxu1  ;;  %2942 = vmatmul.mubr.msk.f32.vlgmr.msra.gmra.mrb[14].mxu1 %vm2769_vm11, %v2756_v63 }
 0x37c   :  { %v2839_v10 = vpop.f32.mrb[14].mxu1 }
 0x37d   :  { %v2840_v6 = vadd.f32 %v2932_v9, %v2839_v10  ;;  %v2943_v11 = vpop.f32.mrb[15].mxu1 }
 0x37f   :  { %2843 = vst [vmem:[#allocation2] sm:$0x3] %v2840_v6 }
 0x380   :  { %3088 = shalt.err (!%p3085_p4)
}
 0x381   :  { %s3089_s0 = scalar_lea.hbm %s3601_s6, 32 }
 0x382   :  { %p3090_p5 = scmp.ne.s32.totalorder %s3601_s6, %s3089_s0  ;;  %p3093_p6 = scmp.lt.u32.totalorder %s3089_s0, %s3601_s6 }
 0x384   :  { %p3095_p7 = pnand %p3093_p6, %p3090_p5 }
 0x386   :  { %3098 = shalt.err (!%p3095_p7)
}
 0x387   :  { %2853 = dma.vmem_to_hbm [thread:$0]  %s2851_s14, 32, %s3601_s6, [#allocation3]  }
 0x388   :  { %3099 = dma.done.wait [#allocation3], 32  }
 0x389   :  { %3100 = vsyncadd [#allocation3], 4294967264 }
 0x38a   :  { %2857 = vsyncpa [#allocation3], 1 }

</bundles_post_ra>
